<compile_context>
chip_gen: v7x
topology: tpu7x:2x2x1
jax: 0.10.0
libtpu: 0.0.40
codegen_flags: <defaults>
</compile_context>

<pallas_src>
import jax
import jax.numpy as jnp
from jax.experimental import pallas as pl
from jax.experimental.pallas import tpu as pltpu


def _round_up(x: int, m: int) -> int:
    return (x + m - 1) // m * m


def feature_extractor_kernel(x_ref, w_ref, b_ref, o_ref):
    # x_ref: (TB, S), w_ref: (S, H), b_ref: (1, H), o_ref: (TB, H)
    y = jnp.dot(x_ref[...], w_ref[...], preferred_element_type=jnp.float32)
    y = y + b_ref[...]                 # (1, H) broadcasts over rows, f32
    o_ref[...] = jnp.tanh(y).astype(o_ref.dtype)


def feature_extractor(x, w, b, *, max_tile_b: int = 8192, force_pallas: bool = False):
    """y = tanh(x @ w + b).

    x: (B, space_dims) f32
    w: (space_dims, hidden_dims) f32  (transposed vs. nn.Linear weight)
    b: (hidden_dims,) f32
    """
    B, S = x.shape
    S2, H = w.shape
    assert S == S2 and b.shape == (H,)

    # Small-problem fast path: at tiny shapes the pallas_call is pure
    # launch + DMA overhead; let XLA fuse the trivial matmul instead.
    if not force_pallas and B * H < 4096:
        return jnp.tanh(x @ w + b[None, :])

    b2 = b.reshape(1, H)

    # Batch tile: as large as the cap allows (amortize ~0.35 us/step), but
    # when B is large, split into >=4 steps so v7x's two TensorCores each get
    # >=2 steps (and double-buffering has something to overlap).
    TB = min(max_tile_b, _round_up(B, 8))
    if B >= 32:
        TB = min(TB, max(8, _round_up(pl.cdiv(B, 4), 8)))

    grid = (pl.cdiv(B, TB),)   # ragged last block is masked on writeback

    # Honest cost estimate from the real (unpadded) shapes.
    cost = pl.CostEstimate(
        flops=2 * B * S * H,
        transcendentals=B * H,
        bytes_accessed=4 * (B * S + S * H + H + B * H),
    )

    return pl.pallas_call(
        feature_extractor_kernel,
        out_shape=jax.ShapeDtypeStruct((B, H), x.dtype),
        grid=grid,
        in_specs=[
            pl.BlockSpec((TB, S), lambda i: (i, 0)),   # x streamed over batch
            pl.BlockSpec((S, H), lambda i: (0, 0)),    # weight resident in VMEM
            pl.BlockSpec((1, H), lambda i: (0, 0)),    # bias resident in VMEM
        ],
        out_specs=pl.BlockSpec((TB, H), lambda i: (i, 0)),
        compiler_params=pltpu.CompilerParams(
            dimension_semantics=("parallel",),         # v7x: shard batch over 2 TCs
        ),
        cost_estimate=cost,
    )(x, w, b2)


def feature_extractor_ref(x, w, b):
    return jnp.tanh(x @ w + b[None, :])


if __name__ == "__main__":
    key = jax.random.PRNGKey(0)
    kx, kw, kb, kx2 = jax.random.split(key, 4)

    # Small shapes consistent with the module: batch=8, space_dims=16, hidden_dims=32.
    B, space_dims, hidden_dims = 8, 16, 32

    x = jax.random.normal(kx, (B, space_dims), dtype=jnp.float32)

    # Deterministic parameter init (mimics nn.Linear's uniform(-1/sqrt(fan_in), ...)).
    bound = 1.0 / jnp.sqrt(jnp.float32(space_dims))
    w = jax.random.uniform(kw, (space_dims, hidden_dims), dtype=jnp.float32,
                           minval=-bound, maxval=bound)
    b = jax.random.uniform(kb, (hidden_dims,), dtype=jnp.float32,
                           minval=-bound, maxval=bound)

    # Force the Pallas path at small shapes to validate the kernel itself.
    y = jax.block_until_ready(feature_extractor(x, w, b, force_pallas=True))
    y_ref = feature_extractor_ref(x, w, b)
    assert y.shape == (B, hidden_dims)
    assert jnp.allclose(y, y_ref, atol=1e-5, rtol=1e-5), "mismatch vs reference (small B)"

    # Larger, non-multiple batch exercises the tiled grid + ragged last block.
    B2 = 1040
    x2 = jax.random.normal(kx2, (B2, space_dims), dtype=jnp.float32)
    y2 = jax.block_until_ready(feature_extractor(x2, w, b))
    y2_ref = feature_extractor_ref(x2, w, b)
    assert y2.shape == (B2, hidden_dims)
    assert jnp.allclose(y2, y2_ref, atol=1e-5, rtol=1e-5), "mismatch vs reference (tiled B)"

    print("KERNEL_OK")
</pallas_src>

<mosaic_0001>
module attributes {stable_mosaic.version = 11 : i64} {
  func.func @feature_extractor_kernel(%arg0: i32, %arg1: memref<8x16xf32, #tpu.memory_space<vmem>>, %arg2: memref<16x32xf32, #tpu.memory_space<vmem>>, %arg3: memref<1x32xf32, #tpu.memory_space<vmem>>, %arg4: memref<8x32xf32, #tpu.memory_space<vmem>>) attributes {dimension_semantics = [#tpu.dimension_semantics<parallel>], iteration_bounds = array<i64: 1>, scalar_prefetch = 0 : i64, scratch_operands = 0 : i64, tpu.core_type = #tpu.core_type<tc>, window_params = [{transform_indices = @transform_0, window_bounds = array<i64: 8, 16>}, {pipeline_mode = #tpu.pipeline_mode<synchronous>, transform_indices = @transform_1, window_bounds = array<i64: 16, 32>}, {pipeline_mode = #tpu.pipeline_mode<synchronous>, transform_indices = @transform_2, window_bounds = array<i64: 1, 32>}, {transform_indices = @transform_3, window_bounds = array<i64: 8, 32>}]} {
    %c0 = arith.constant 0 : index
    %c0_0 = arith.constant 0 : index
    %0 = vector.load %arg1[%c0, %c0_0] : memref<8x16xf32, #tpu.memory_space<vmem>>, vector<8x16xf32>
    %c0_1 = arith.constant 0 : index
    %c0_2 = arith.constant 0 : index
    %1 = vector.load %arg2[%c0_1, %c0_2] : memref<16x32xf32, #tpu.memory_space<vmem>>, vector<16x32xf32>
    %cst = arith.constant dense<0.000000e+00> : vector<8x32xf32>
    %2 = tpu.matmul %0, %1, %cst {dimension_numbers = #tpu.dot_dimension_numbers<[1], [0], [0], [1], [0, 0, 1, 1], [], []>} : vector<8x16xf32>, vector<16x32xf32>, vector<8x32xf32> -> vector<8x32xf32>
    %c0_3 = arith.constant 0 : index
    %c0_4 = arith.constant 0 : index
    %3 = vector.load %arg3[%c0_3, %c0_4] : memref<1x32xf32, #tpu.memory_space<vmem>>, vector<1x32xf32>
    %4 = vector.broadcast %3 : vector<1x32xf32> to vector<8x32xf32>
    %5 = arith.addf %2, %4 : vector<8x32xf32>
    %6 = math.tanh %5 : vector<8x32xf32>
    %c0_5 = arith.constant 0 : index
    %c0_6 = arith.constant 0 : index
    %7 = vector.load %arg4[%c0_5, %c0_6] : memref<8x32xf32, #tpu.memory_space<vmem>>, vector<8x32xf32>
    tpu.vector_store %arg4[%c0_5, %c0_6], %6 {strides = array<i32>} : memref<8x32xf32, #tpu.memory_space<vmem>>, vector<8x32xf32>,
    return
  }
  func.func @transform_0(%arg0: i32) -> (i32, i32) {
    %c0_i32 = arith.constant 0 : i32
    %c0_i32_0 = arith.constant 0 : i32
    return %arg0, %c0_i32 : i32, i32
  }
  func.func @transform_1(%arg0: i32) -> (i32, i32) {
    %c0_i32 = arith.constant 0 : i32
    %c0_i32_0 = arith.constant 0 : i32
    %c0_i32_1 = arith.constant 0 : i32
    return %c0_i32, %c0_i32_0 : i32, i32
  }
  func.func @transform_2(%arg0: i32) -> (i32, i32) {
    %c0_i32 = arith.constant 0 : i32
    %c0_i32_0 = arith.constant 0 : i32
    %c0_i32_1 = arith.constant 0 : i32
    return %c0_i32, %c0_i32_0 : i32, i32
  }
  func.func @transform_3(%arg0: i32) -> (i32, i32) {
    %c0_i32 = arith.constant 0 : i32
    %c0_i32_0 = arith.constant 0 : i32
    return %arg0, %c0_i32 : i32, i32
  }
}

</mosaic_0001>

<bundles_post_ra>
// kernel: tpu_custom_call.1
= control target key start
LH: loop header
LB: loop body
LE: loop exit
PB: predicated region body
PF: predicated region fallthrough
CT: control target
= control target key end

     0   :  { %8 = vsyncpa [#allocation3], 0  ;;  %s315_s0 = inlined_call_operand.hbm [shape: f32[8,16], index: 0, kind: input, shape index: {}]   ;;  %s316_s1 = inlined_call_operand.hbm [shape: f32[16,32], index: 1, kind: input, shape index: {}]   ;;  %s317_s2 = inlined_call_operand.vmem [shape: f32[1,32], index: 2, kind: input, shape index: {}]   ;;  %s318_s3 = inlined_call_operand.hbm [shape: f32[8,32], index: 3, kind: output, shape index: {}]  }
   0x1   :  { %9 = vsyncpa [#allocation6], 0 }
   0x2   :  { %10 = vsyncpa [#allocation4], 0  ;;  %s241_s12 = smov [#allocation2]   ;;  %s242_s14 = smov [#allocation5]  }
   0x3   :  { %s17_s13 = sshll.u32 %s241_s12, 4  ;;  %s26_s15 = sshll.u32 %s242_s14, 4  ;;  %s18_s13 = int_to_ptr.vmem [resolvable:$true] %s17_s13  ;;  %s269_s15 = int_to_ptr.vmem [resolvable:$true] %s26_s15 }
   0x4   :  { %s169_s18 = scalar_lea.hbm %s315_s0, 128 }
   0x5   :  { %p170_p0 = scmp.ne.s32.totalorder %s315_s0, %s169_s18  ;;  %p173_p1 = scmp.lt.u32.totalorder %s169_s18, %s315_s0 }
   0x7   :  { %p175_p2 = pnand %p173_p1, %p170_p0 }
   0x9   :  { %178 = shalt.err (!%p175_p2)
}
   0xa   :  { %s179_s23 = scalar_lea.vmem %s18_s13, 128  ;;  %p184_p4 = scmp.lt.s32.totalorder %s18_s13, %s18_s13 }
   0xb   :  { %p180_p3 = scmp.ne.s32.totalorder %s18_s13, %s179_s23  ;;  %p185_p5 = scmp.lt.s32.totalorder %s179_s23, %s179_s23 }
   0xd   :  { %p186_p6 = por %p185_p5, %p184_p4 }
   0xf   :  { %p187_p7 = pnand %p186_p6, %p180_p3 }
  0x11   :  { %190 = shalt.err (!%p187_p7)
}
  0x12   :  { %20 = dma.hbm_to_vmem [thread:$0]  %s315_s0, 128, %s18_s13, [#allocation3]  }
  0x13   :  { %s191_s28 = scalar_lea.hbm %s316_s1, 256 }
  0x14   :  { %p192_p8 = scmp.ne.s32.totalorder %s316_s1, %s191_s28  ;;  %p195_p9 = scmp.lt.u32.totalorder %s191_s28, %s316_s1 }
  0x16   :  { %p197_p10 = pnand %p195_p9, %p192_p8 }
  0x18   :  { %200 = shalt.err (!%p197_p10)
}
  0x19   :  { %s201_s6 = scalar_lea.vmem %s269_s15, 256  ;;  %p206_p12 = scmp.lt.s32.totalorder %s269_s15, %s269_s15 }
  0x1a   :  { %p202_p11 = scmp.ne.s32.totalorder %s269_s15, %s201_s6  ;;  %p207_p13 = scmp.lt.s32.totalorder %s201_s6, %s201_s6 }
  0x1c   :  { %p208_p0 = por %p207_p13, %p206_p12 }
  0x1e   :  { %p209_p1 = pnand %p208_p0, %p202_p11 }
  0x20   :  { %212 = shalt.err (!%p209_p1)
}
  0x21   :  { %s243_s0 = smov 128   ;;  %s244_s7 = smov 8  }
  0x22   :  { %32 = dma.hbm_to_vmem [thread:$0]  %s316_s1, 256, %s269_s15, [#allocation6], %s243_s0, %s243_s0, %s244_s7  }
  0x23   :  { %235 = dma.done.wait [#allocation3], 128  }
  0x24   :  { %236 = vsyncadd [#allocation3], 4294967168 }
  0x25   :  { %237 = dma.done.wait [#allocation6], 256  }
  0x26   :  { %238 = vsyncadd [#allocation6], 4294967040  ;;  %v245_v0 = vmov 0.0|0.0   ;;  %vm246_vm0 = vmmov 0   ;;  %v247_v1 = vmov 0.0   ;;  %v42_v2 = vld [vmem:[#allocation5] sm:$0xff] }
  0x27   :  { %156 = vmatprep.subr.bf16.mxu0 %v245_v0  ;;  %153 = vmatprep.mubr.msk.f32.mxu0 %vm246_vm0, %v247_v1  ;;  %v43_v3 = vld [vmem:[#allocation5 + $0x8] sm:$0xff]  ;;  %v41_v5 = vld [vmem:[#allocation2] sm:$0xff]  ;;  %vm51_vm1 = vcmask 130048   ;;  %s248_s1 = smov [#allocation7]   ;;  %vm126_vm2 = vcmask 261120  }
  0x28   :  { %v157_v4 = vpack.c.bf16 %v43_v3, %v42_v2  ;;  %v144_v6 = vld [vmem:[%s317_s2] ss:$0 sm:$0xff]  ;;  %s134_s12 = sshll.u32 %s248_s1, 4  ;;  %s135_s12 = int_to_ptr.vmem [resolvable:$true] %s134_s12 }
  0x29   :  { %s213_s13 = scalar_lea.vmem %s135_s12, 128  ;;  %p218_p3 = scmp.lt.s32.totalorder %s135_s12, %s135_s12 }
  0x2a   :  { %158 = vmatpush3.bf16.msra.mxu0 %v157_v4  ;;  %p214_p2 = scmp.ne.s32.totalorder %s135_s12, %s213_s13  ;;  %p219_p4 = scmp.lt.s32.totalorder %s213_s13, %s213_s13 }
  0x2c   :  { %p220_p5 = por %p219_p4, %p218_p3 }
  0x2d   :  { %154 = vmatmul.mubr.msk.f32.vlgmr.msra.gmra.mrb[0].mxu0 %vm51_vm1, %v41_v5 }
  0x2e   :  { %p221_p6 = pnand %p220_p5, %p214_p2 }
 0x100   :  { %v121_v7 = vpop.f32.mrb[0].mxu0 }
 0x101   :  { %v122_v8 = vadd.f32 %v144_v6, %v121_v7  ;;  %v155_v9 = vpop.f32.mrb[1].mxu0 }
 0x103   :  { %167 = vtanh.f32 %v122_v8 }
 0x10d   :  { %v168_v10 = vpop.eup %167 }
 0x10e   :  { %127 = vst.msk [vmem:[#allocation7] sm:$0xff] %vm126_vm2, %v168_v10 }
 0x10f   :  { %224 = shalt.err (!%p221_p6)
}
 0x110   :  { %s225_s2 = scalar_lea.hbm %s318_s3, 128 }
 0x111   :  { %p226_p7 = scmp.ne.s32.totalorder %s318_s3, %s225_s2  ;;  %p229_p8 = scmp.lt.u32.totalorder %s225_s2, %s318_s3 }
 0x113   :  { %p231_p9 = pnand %p229_p8, %p226_p7 }
 0x115   :  { %234 = shalt.err (!%p231_p9)
}
 0x116   :  { %137 = dma.vmem_to_hbm [thread:$0]  %s135_s12, 128, %s318_s3, [#allocation4]  }
 0x117   :  { %239 = dma.done.wait [#allocation4], 128  }
 0x118   :  { %240 = vsyncadd [#allocation4], 4294967168 }
 0x119   :  { %141 = vsyncpa [#allocation3], 1 }
 0x11a   :  { %142 = vsyncpa [#allocation6], 1 }
 0x11b   :  { %143 = vsyncpa [#allocation4], 1 }

</bundles_post_ra>
